<compile_context>
chip_gen: v7x
topology: tpu7x:2x2x1
jax: 0.10.0
libtpu: 0.0.40
codegen_flags: <defaults>
</compile_context>

<pallas_src>
import functools

import jax
import jax.numpy as jnp
from jax.experimental import pallas as pl
from jax.experimental.pallas import tpu as pltpu


# ---------------------------------------------------------------------------
# Conv helper: dilated/strided Conv1d (channels-last) + bias + ReLU for one
# (batch, C_out-tile, time-tile) block.  Returns f32 [t_blk, co_tile].
# ---------------------------------------------------------------------------
def _conv_relu(x_ref, w_ref, b_ref, ti, *, context_size, dilation, stride,
               t_blk, use_im2col):
    c_in = x_ref.shape[-1]
    span = (t_blk - 1) * stride + 1            # contiguous input rows per tap
    base = pl.multiple_of(ti * (t_blk * stride), t_blk * stride)

    def tap(k):                                # x rows feeding tap k
        rows = x_ref[0, pl.ds(base + k * dilation, span), :]   # [span, C_in]
        if stride == 1:
            return rows
        # TODO(synk): a strided pl.ds load would avoid this value-level
        # strided slice (XLU sublane gather) for stride > 1.
        return jax.lax.slice(rows, (0, 0), (span, c_in), (stride, 1))

    if use_im2col:
        # Small C_in: lay the K taps along the lane axis -> ONE MXU matmul
        # with contraction K*C_in.  w_ref block: [K*C_in, co_tile].
        taps = [tap(k) for k in range(context_size)]
        xcat = taps[0] if context_size == 1 else jnp.concatenate(taps, axis=-1)
        acc = jnp.dot(xcat, w_ref[...], preferred_element_type=jnp.float32)
    else:
        # C_in already saturates the MXU: K accumulated dots, no concat and no
        # K-fold VMEM blow-up.  w_ref block: [K, C_in, co_tile].
        acc = jnp.dot(tap(0), w_ref[0], preferred_element_type=jnp.float32)
        for k in range(1, context_size):
            acc = acc + jnp.dot(tap(k), w_ref[k],
                                preferred_element_type=jnp.float32)

    acc = acc + b_ref[...].astype(jnp.float32)        # (1, co_tile) broadcast
    return jnp.maximum(acc, 0.0)                      # ReLU (pre-BN)


# ---------------------------------------------------------------------------
# Shared batch-stats accumulation (grid = (co, b, ti); b, ti are "arbitrary").
# Stats live in VMEM scratch and are written to HBM once per C_out tile.
# ---------------------------------------------------------------------------
def _accumulate_stats(y, sum_ref, sq_ref, sum_sc, sq_sc):
    b, ti = pl.program_id(1), pl.program_id(2)

    @pl.when((b == 0) & (ti == 0))
    def _():
        sum_sc[...] = jnp.zeros_like(sum_sc)
        sq_sc[...] = jnp.zeros_like(sq_sc)

    sum_sc[...] += y.sum(axis=0, keepdims=True)
    sq_sc[...] += (y * y).sum(axis=0, keepdims=True)

    @pl.when((b == pl.num_programs(1) - 1) & (ti == pl.num_programs(2) - 1))
    def _():
        sum_ref[...] = sum_sc[...]
        sq_ref[...] = sq_sc[...]


# ---------------------------------------------------------------------------
# Pass-1 kernels
# ---------------------------------------------------------------------------
def _stats_kernel(x_ref, w_ref, b_ref, sum_ref, sq_ref, sum_sc, sq_sc, *,
                  conv_kw):
    """Recompute strategy: conv+ReLU, accumulate stats only (no y to HBM)."""
    y = _conv_relu(x_ref, w_ref, b_ref, pl.program_id(2), **conv_kw)
    _accumulate_stats(y, sum_ref, sq_ref, sum_sc, sq_sc)


def _conv_y_stats_kernel(x_ref, w_ref, b_ref, y_ref, sum_ref, sq_ref,
                         sum_sc, sq_sc, *, conv_kw):
    """Roundtrip strategy: conv+ReLU, write y (compute dtype) and stats."""
    y = _conv_relu(x_ref, w_ref, b_ref, pl.program_id(2), **conv_kw)
    y_ref[0] = y.astype(y_ref.dtype)
    _accumulate_stats(y, sum_ref, sq_ref, sum_sc, sq_sc)


# ---------------------------------------------------------------------------
# Pass-2 kernels
# ---------------------------------------------------------------------------
def _conv_bn_kernel(x_ref, w_ref, b_ref, scale_ref, shift_ref, o_ref, *,
                    conv_kw):
    """Recompute strategy: recompute conv+ReLU and apply BN affine."""
    y = _conv_relu(x_ref, w_ref, b_ref, pl.program_id(2), **conv_kw)
    o_ref[0] = (y * scale_ref[...] + shift_ref[...]).astype(o_ref.dtype)


def _bn_apply_kernel(y_ref, scale_ref, shift_ref, o_ref):
    """Roundtrip strategy: purely elementwise BN apply (memory-bound)."""
    y = y_ref[0].astype(jnp.float32)
    o_ref[0] = (y * scale_ref[...] + shift_ref[...]).astype(o_ref.dtype)


# ---------------------------------------------------------------------------
# Wrapper helpers
# ---------------------------------------------------------------------------
def _round_up(x, m):
    return (x + m - 1) // m * m


def _pick_co_tile(c_out_p):
    """Lane-dense (128-multiple) C_out tile, capped at 512; prefer >= 2 tiles
    so the 'parallel' C_out axis can feed a 2nd TensorCore (v7x megacore)."""
    cap = min(512, max(128, c_out_p // 2))
    t = (cap // 128) * 128
    while t >= 128:
        if c_out_p % t == 0:
            return t
        t -= 128
    return c_out_p   # unreachable: c_out_p is a multiple of 128


def _pick_time_block(t_out, time_block):
    """Output-time tile: multiple of 8 dividing t_out (or the full t_out)."""
    if time_block is not None:
        assert time_block == t_out or (
            time_block % 8 == 0 and t_out % time_block == 0)
        return time_block
    if t_out <= 512:
        return t_out
    for cand in range(512, 7, -8):
        if t_out % cand == 0:
            return cand
    return t_out


def _recompute_threshold():
    """K*C_in crossover below which recomputing the conv in pass 2 beats a
    y round-trip through HBM (~ 2*peak_bf16_flops / HBM_bw per generation)."""
    try:
        kind = jax.devices()[0].device_kind.lower()
    except Exception:
        kind = ""
    if "v6" in kind:
        return 1280
    if "v7" in kind:
        return 620
    if "v5" in kind:
        return 480
    return 512


def _vmem_limit_bytes(per_step_bytes):
    """Scoped-VMEM request: covers the per-step footprint with slack, capped at
    3/4 of the physical per-core VMEM (64 MiB v7x / 128 MiB v5e,v6e)."""
    try:
        phys = pltpu.get_tpu_info().vmem_capacity_bytes
    except Exception:
        phys = 64 * 1024 * 1024          # conservative fallback (v7x per-core)
    cap = (3 * phys) // 4
    return int(min(cap, max(32 * 1024 * 1024, 2 * per_step_bytes)))


# ---------------------------------------------------------------------------
# Public forward
# ---------------------------------------------------------------------------
def tdnn_forward(x, w_kio, bias, gamma, beta, *, context_size, dilation=1,
                 stride=1, eps=1e-5, compute_dtype=jnp.float32,
                 strategy="auto", time_block=None):
    """x: [B, T, C_in].  w_kio: [K, C_in, C_out].  Returns [B, T_out, C_out] f32.

    Matches nn.Conv1d -> ReLU -> BatchNorm1d (training-mode batch statistics).
    """
    B, T, C_in = x.shape
    K, _, C_out = w_kio.shape
    assert K == context_size
    t_out = (T - (context_size - 1) * dilation - 1) // stride + 1

    # --- pass-2 strategy: recompute conv vs. round-trip y through HBM -------
    if strategy == "auto":
        strategy = ("recompute" if K * C_in <= _recompute_threshold()
                    else "roundtrip")
    assert strategy in ("recompute", "roundtrip")

    # --- tiling: pad C_out to 128 multiples, pick lane-dense tiles ----------
    C_out_p = _round_up(C_out, 128)
    pad = C_out_p - C_out
    co_tile = _pick_co_tile(C_out_p)
    n_co = C_out_p // co_tile
    t_blk = _pick_time_block(t_out, time_block)
    n_t = t_out // t_blk
    use_im2col = C_in < 256

    # --- parameter prep ------------------------------------------------------
    xc = x.astype(compute_dtype)
    w_p = jnp.pad(w_kio, ((0, 0), (0, 0), (0, pad))).astype(compute_dtype)
    bias_p = jnp.pad(bias, (0, pad)).reshape(1, C_out_p).astype(jnp.float32)
    gamma_p = jnp.pad(gamma, (0, pad), constant_values=1.0)
    beta_p = jnp.pad(beta, (0, pad))

    if use_im2col:
        # k-major rows match the in-kernel im2col concat order.
        w_arr = w_p.reshape(K * C_in, C_out_p)
        w_spec1 = pl.BlockSpec((K * C_in, co_tile), lambda co, b, ti: (0, co))
        w_spec2 = pl.BlockSpec((K * C_in, co_tile), lambda b, co, ti: (0, co))
    else:
        w_arr = w_p
        w_spec1 = pl.BlockSpec((K, C_in, co_tile), lambda co, b, ti: (0, 0, co))
        w_spec2 = pl.BlockSpec((K, C_in, co_tile), lambda b, co, ti: (0, 0, co))

    cs = jnp.dtype(compute_dtype).itemsize
    w_bytes = K * C_in * co_tile * cs
    est = (2 * T * C_in * cs                   # full-row x block (dbl-buffered)
           + 2 * w_bytes                       # weight block
           + 4 * t_blk * co_tile * 4           # out/y block + f32 accumulator
           + (t_blk * K * C_in * cs if use_im2col else t_blk * C_in * cs)
           + (2 << 20))
    vmem_limit = _vmem_limit_bytes(est)

    conv_kw = dict(context_size=context_size, dilation=dilation, stride=stride,
                   t_blk=t_blk, use_im2col=use_im2col)

    # ==== pass 1: batch statistics (+ y write for the roundtrip strategy) ===
    # Grid (co, b, ti): co-tiles are independent -> "parallel" (megacore);
    # stats accumulate across b, ti -> they must stay "arbitrary".
    grid1 = (n_co, B, n_t)
    x_spec1 = pl.BlockSpec((1, T, C_in), lambda co, b, ti: (b, 0, 0))
    b_spec1 = pl.BlockSpec((1, co_tile), lambda co, b, ti: (0, co))
    stats_spec1 = pl.BlockSpec((1, co_tile), lambda co, b, ti: (0, co))
    stats_shape = jax.ShapeDtypeStruct((1, C_out_p), jnp.float32)
    stats_scratch = [pltpu.VMEM((1, co_tile), jnp.float32),
                     pltpu.VMEM((1, co_tile), jnp.float32)]
    cparams1 = pltpu.CompilerParams(
        dimension_semantics=("parallel", "arbitrary", "arbitrary"),
        vmem_limit_bytes=vmem_limit)

    y_act = None
    if strategy == "recompute":
        s, sq = pl.pallas_call(
            functools.partial(_stats_kernel, conv_kw=conv_kw),
            grid=grid1,
            in_specs=[x_spec1, w_spec1, b_spec1],
            out_specs=[stats_spec1, stats_spec1],
            out_shape=(stats_shape, stats_shape),
            scratch_shapes=stats_scratch,
            compiler_params=cparams1,
        )(xc, w_arr, bias_p)
    else:
        y_spec1 = pl.BlockSpec((1, t_blk, co_tile),
                               lambda co, b, ti: (b, ti, co))
        y_act, s, sq = pl.pallas_call(
            functools.partial(_conv_y_stats_kernel, conv_kw=conv_kw),
            grid=grid1,
            in_specs=[x_spec1, w_spec1, b_spec1],
            out_specs=[y_spec1, stats_spec1, stats_spec1],
            out_shape=(jax.ShapeDtypeStruct((B, t_out, C_out_p), compute_dtype),
                       stats_shape, stats_shape),
            scratch_shapes=stats_scratch,
            compiler_params=cparams1,
        )(xc, w_arr, bias_p)

    # Tiny scalar glue: fold stats into the BN affine (train-mode, biased var).
    n = B * t_out
    mean = s / n
    var = jnp.maximum(sq / n - mean * mean, 0.0)     # clamp one-pass variance
    inv = jax.lax.rsqrt(var + eps)
    scale = gamma_p.reshape(1, C_out_p).astype(jnp.float32) * inv
    shift = beta_p.reshape(1, C_out_p).astype(jnp.float32) - mean * scale

    # ==== pass 2: apply BN (recompute conv, or stream y back) ===============
    # Grid (b, co, ti): x / y block indices don't depend on the inner axes, so
    # x is DMA'd once per batch element even when n_co > 1.
    grid2 = (B, n_co, n_t)
    out_spec = pl.BlockSpec((1, t_blk, co_tile), lambda b, co, ti: (b, ti, co))
    ss_spec = pl.BlockSpec((1, co_tile), lambda b, co, ti: (0, co))
    out_shape = jax.ShapeDtypeStruct((B, t_out, C_out_p), jnp.float32)
    cparams2 = pltpu.CompilerParams(
        dimension_semantics=("parallel", "parallel", "arbitrary"),
        vmem_limit_bytes=vmem_limit)

    if strategy == "recompute":
        x_spec2 = pl.BlockSpec((1, T, C_in), lambda b, co, ti: (b, 0, 0))
        b_spec2 = pl.BlockSpec((1, co_tile), lambda b, co, ti: (0, co))
        out_p = pl.pallas_call(
            functools.partial(_conv_bn_kernel, conv_kw=conv_kw),
            grid=grid2,
            in_specs=[x_spec2, w_spec2, b_spec2, ss_spec, ss_spec],
            out_specs=out_spec,
            out_shape=out_shape,
            compiler_params=cparams2,
        )(xc, w_arr, bias_p, scale, shift)
    else:
        y_spec2 = pl.BlockSpec((1, t_blk, co_tile),
                               lambda b, co, ti: (b, ti, co))
        out_p = pl.pallas_call(
            _bn_apply_kernel,
            grid=grid2,
            in_specs=[y_spec2, ss_spec, ss_spec],
            out_specs=out_spec,
            out_shape=out_shape,
            compiler_params=cparams2,
        )(y_act, scale, shift)

    return out_p[:, :, :C_out] if pad else out_p


# ---------------------------------------------------------------------------
# Pure-JAX reference (mirrors the PyTorch module's forward, f32)
# ---------------------------------------------------------------------------
def tdnn_reference(x, w_kio, bias, gamma, beta, *, context_size, dilation=1,
                   stride=1, eps=1e-5):
    w_oik = jnp.transpose(w_kio, (2, 1, 0))           # torch [C_out, C_in, K]
    xt = jnp.transpose(x, (0, 2, 1))                  # [B, C_in, T]
    y = jax.lax.conv_general_dilated(
        xt, w_oik, window_strides=(stride,), padding="VALID",
        rhs_dilation=(dilation,), dimension_numbers=("NCH", "OIH", "NCH"))
    y = y + bias.reshape(1, -1, 1)
    y = jnp.maximum(y, 0.0)                           # ReLU
    mean = y.mean(axis=(0, 2), keepdims=True)         # train-mode BN
    var = ((y - mean) ** 2).mean(axis=(0, 2), keepdims=True)   # biased var
    y = (y - mean) * jax.lax.rsqrt(var + eps)
    y = y * gamma.reshape(1, -1, 1) + beta.reshape(1, -1, 1)
    return jnp.transpose(y, (0, 2, 1))                # [B, T_out, C_out]


if __name__ == "__main__":
    root = jax.random.PRNGKey(0)
    k1, k2 = jax.random.split(root)

    def make_inputs(key, B, T, C_in, C_out, K):
        kx, kw, kb, kg, kbe = jax.random.split(key, 5)
        x = jax.random.normal(kx, (B, T, C_in), dtype=jnp.float32)
        w = 0.1 * jax.random.normal(kw, (K, C_in, C_out), dtype=jnp.float32)
        b = 0.1 * jax.random.normal(kb, (C_out,), dtype=jnp.float32)
        g = 1.0 + 0.05 * jax.random.normal(kg, (C_out,), dtype=jnp.float32)
        be = 0.05 * jax.random.normal(kbe, (C_out,), dtype=jnp.float32)
        return x, w, b, g, be

    def check(name, out, ref, atol, rtol):
        out = jax.block_until_ready(out)
        assert out.shape == ref.shape, (name, out.shape, ref.shape)
        err = float(jnp.max(jnp.abs(out - ref)))
        assert jnp.allclose(out, ref, atol=atol, rtol=rtol), (name, err)

    # --- small shapes (im2col path, C_out padded 16 -> 128): both pass-2
    #     strategies in f32, plus the bf16 compute path.  Tolerances allow for
    #     MXU default-precision differences vs. the XLA reference conv.
    B, T, C_in, C_out, K, dil, st = 2, 16, 8, 16, 3, 2, 1
    x, w, b, g, be = make_inputs(k1, B, T, C_in, C_out, K)
    ref = tdnn_reference(x, w, b, g, be, context_size=K, dilation=dil, stride=st)

    out = tdnn_forward(x, w, b, g, be, context_size=K, dilation=dil, stride=st,
                       strategy="recompute")
    check("small/recompute/f32", out, ref, 2e-3, 2e-3)

    out = tdnn_forward(x, w, b, g, be, context_size=K, dilation=dil, stride=st,
                       strategy="roundtrip")
    check("small/roundtrip/f32", out, ref, 2e-3, 2e-3)

    out = tdnn_forward(x, w, b, g, be, context_size=K, dilation=dil, stride=st,
                       compute_dtype=jnp.bfloat16)           # auto strategy
    check("small/auto/bf16", out, ref, 1e-1, 1e-1)

    # --- wider channels: K accumulated-dot conv path (C_in >= 256), two
    #     lane-dense C_out tiles, explicit time tiling (2 x 64-row blocks),
    #     roundtrip pass 2 (the right trade for K*C_in = 768 on v5e/v7x).
    B, T, C_in, C_out, K, dil, st = 2, 130, 256, 256, 3, 1, 1
    x, w, b, g, be = make_inputs(k2, B, T, C_in, C_out, K)
    ref = tdnn_reference(x, w, b, g, be, context_size=K, dilation=dil, stride=st)
    out = tdnn_forward(x, w, b, g, be, context_size=K, dilation=dil, stride=st,
                       strategy="roundtrip", time_block=64)
    check("wide/roundtrip/f32", out, ref, 2e-2, 2e-2)

    print("KERNEL_OK")
</pallas_src>

<mosaic_0001>
module attributes {stable_mosaic.version = 11 : i64} {
  func.func @_stats_kernel(%arg0: i32, %arg1: i32, %arg2: i32, %arg3: memref<1x16x8xf32, #tpu.memory_space<vmem>>, %arg4: memref<24x128xf32, #tpu.memory_space<vmem>>, %arg5: memref<1x128xf32, #tpu.memory_space<vmem>>, %arg6: memref<1x128xf32, #tpu.memory_space<vmem>>, %arg7: memref<1x128xf32, #tpu.memory_space<vmem>>, %arg8: memref<1x128xf32, #tpu.memory_space<vmem>>, %arg9: memref<1x128xf32, #tpu.memory_space<vmem>>) attributes {dimension_semantics = [#tpu.dimension_semantics<parallel>, #tpu.dimension_semantics<arbitrary>, #tpu.dimension_semantics<arbitrary>], iteration_bounds = array<i64: 1, 2, 1>, scalar_prefetch = 0 : i64, scratch_operands = 2 : i64, tpu.core_type = #tpu.core_type<tc>, window_params = [{transform_indices = @transform_0, window_bounds = array<i64: 1, 16, 8>}, {transform_indices = @transform_1, window_bounds = array<i64: 24, 128>}, {transform_indices = @transform_2, window_bounds = array<i64: 1, 128>}, {transform_indices = @transform_3, window_bounds = array<i64: 1, 128>}, {transform_indices = @transform_4, window_bounds = array<i64: 1, 128>}]} {
    %c12_i32 = arith.constant 12 : i32
    %0 = arith.muli %arg2, %c12_i32 : i32
    %1 = tpu.assume_multiple %0, 12 : i32
    %c0_i32 = arith.constant 0 : i32
    %2 = arith.addi %1, %c0_i32 : i32
    %c0 = arith.constant 0 : index
    %3 = arith.index_cast %2 : i32 to index
    %c0_0 = arith.constant 0 : index
    %4 = vector.load %arg3[%c0, %3, %c0_0] : memref<1x16x8xf32, #tpu.memory_space<vmem>>, vector<1x12x8xf32>
    %5 = vector.shape_cast %4 : vector<1x12x8xf32> to vector<12x8xf32>
    %c2_i32 = arith.constant 2 : i32
    %6 = arith.addi %1, %c2_i32 : i32
    %c0_1 = arith.constant 0 : index
    %7 = arith.index_cast %6 : i32 to index
    %c0_2 = arith.constant 0 : index
    %8 = vector.load %arg3[%c0_1, %7, %c0_2] : memref<1x16x8xf32, #tpu.memory_space<vmem>>, vector<1x12x8xf32>
    %9 = vector.shape_cast %8 : vector<1x12x8xf32> to vector<12x8xf32>
    %c4_i32 = arith.constant 4 : i32
    %10 = arith.addi %1, %c4_i32 : i32
    %c0_3 = arith.constant 0 : index
    %11 = arith.index_cast %10 : i32 to index
    %c0_4 = arith.constant 0 : index
    %12 = vector.load %arg3[%c0_3, %11, %c0_4] : memref<1x16x8xf32, #tpu.memory_space<vmem>>, vector<1x12x8xf32>
    %13 = vector.shape_cast %12 : vector<1x12x8xf32> to vector<12x8xf32>
    %14 = tpu.concatenate %5, %9, %13 in 1 : vector<12x8xf32>, vector<12x8xf32>, vector<12x8xf32> -> vector<12x24xf32>
    %c0_5 = arith.constant 0 : index
    %c0_6 = arith.constant 0 : index
    %15 = vector.load %arg4[%c0_5, %c0_6] : memref<24x128xf32, #tpu.memory_space<vmem>>, vector<24x128xf32>
    %cst = arith.constant dense<0.000000e+00> : vector<12x128xf32>
    %16 = tpu.matmul %14, %15, %cst {dimension_numbers = #tpu.dot_dimension_numbers<[1], [0], [0], [1], [0, 0, 1, 1], [], []>} : vector<12x24xf32>, vector<24x128xf32>, vector<12x128xf32> -> vector<12x128xf32>
    %c0_7 = arith.constant 0 : index
    %c0_8 = arith.constant 0 : index
    %17 = vector.load %arg5[%c0_7, %c0_8] : memref<1x128xf32, #tpu.memory_space<vmem>>, vector<1x128xf32>
    %18 = vector.broadcast %17 : vector<1x128xf32> to vector<12x128xf32>
    %19 = arith.addf %16, %18 : vector<12x128xf32>
    %cst_9 = arith.constant 0.000000e+00 : f32
    %20 = vector.broadcast %cst_9 : f32 to vector<12x128xf32>
    %21 = arith.maximumf %19, %20 : vector<12x128xf32>
    %c0_i32_10 = arith.constant 0 : i32
    %22 = arith.cmpi eq, %arg1, %c0_i32_10 : i32
    %c0_i32_11 = arith.constant 0 : i32
    %23 = arith.cmpi eq, %arg2, %c0_i32_11 : i32
    %24 = arith.andi %22, %23 : i1
    %25 = arith.extui %24 : i1 to i32
    %c0_i32_12 = arith.constant 0 : i32
    %26 = arith.cmpi ne, %25, %c0_i32_12 : i32
    scf.if %26 {
      %cst_25 = arith.constant 0.000000e+00 : f32
      %43 = vector.broadcast %cst_25 : f32 to vector<1x128xf32>
      %c0_26 = arith.constant 0 : index
      %c0_27 = arith.constant 0 : index
      %44 = vector.load %arg8[%c0_26, %c0_27] : memref<1x128xf32, #tpu.memory_space<vmem>>, vector<1x128xf32>
      tpu.vector_store %arg8[%c0_26, %c0_27], %43 {strides = array<i32>} : memref<1x128xf32, #tpu.memory_space<vmem>>, vector<1x128xf32>,
      %cst_28 = arith.constant 0.000000e+00 : f32
      %45 = vector.broadcast %cst_28 : f32 to vector<1x128xf32>
      %c0_29 = arith.constant 0 : index
      %c0_30 = arith.constant 0 : index
      %46 = vector.load %arg9[%c0_29, %c0_30] : memref<1x128xf32, #tpu.memory_space<vmem>>, vector<1x128xf32>
      tpu.vector_store %arg9[%c0_29, %c0_30], %45 {strides = array<i32>} : memref<1x128xf32, #tpu.memory_space<vmem>>, vector<1x128xf32>,
    } else {
    }
    %c0_13 = arith.constant 0 : index
    %c0_14 = arith.constant 0 : index
    %27 = vector.load %arg8[%c0_13, %c0_14] : memref<1x128xf32, #tpu.memory_space<vmem>>, vector<1x128xf32>
    %cst_15 = arith.constant dense<0.000000e+00> : vector<128xf32>
    %28 = vector.multi_reduction <add>, %21, %cst_15 [0] : vector<12x128xf32> to vector<128xf32>
    %29 = vector.shape_cast %28 : vector<128xf32> to vector<1x128xf32>
    %30 = arith.addf %27, %29 : vector<1x128xf32>
    %c0_16 = arith.constant 0 : index
    %c0_17 = arith.constant 0 : index
    %31 = vector.load %arg8[%c0_16, %c0_17] : memref<1x128xf32, #tpu.memory_space<vmem>>, vector<1x128xf32>
    tpu.vector_store %arg8[%c0_16, %c0_17], %30 {strides = array<i32>} : memref<1x128xf32, #tpu.memory_space<vmem>>, vector<1x128xf32>,
    %c0_18 = arith.constant 0 : index
    %c0_19 = arith.constant 0 : index
    %32 = vector.load %arg9[%c0_18, %c0_19] : memref<1x128xf32, #tpu.memory_space<vmem>>, vector<1x128xf32>
    %33 = arith.mulf %21, %21 : vector<12x128xf32>
    %cst_20 = arith.constant dense<0.000000e+00> : vector<128xf32>
    %34 = vector.multi_reduction <add>, %33, %cst_20 [0] : vector<12x128xf32> to vector<128xf32>
    %35 = vector.shape_cast %34 : vector<128xf32> to vector<1x128xf32>
    %36 = arith.addf %32, %35 : vector<1x128xf32>
    %c0_21 = arith.constant 0 : index
    %c0_22 = arith.constant 0 : index
    %37 = vector.load %arg9[%c0_21, %c0_22] : memref<1x128xf32, #tpu.memory_space<vmem>>, vector<1x128xf32>
    tpu.vector_store %arg9[%c0_21, %c0_22], %36 {strides = array<i32>} : memref<1x128xf32, #tpu.memory_space<vmem>>, vector<1x128xf32>,
    %c1_i32 = arith.constant 1 : i32
    %38 = arith.cmpi eq, %arg1, %c1_i32 : i32
    %c0_i32_23 = arith.constant 0 : i32
    %39 = arith.cmpi eq, %arg2, %c0_i32_23 : i32
    %40 = arith.andi %38, %39 : i1
    %41 = arith.extui %40 : i1 to i32
    %c0_i32_24 = arith.constant 0 : i32
    %42 = arith.cmpi ne, %41, %c0_i32_24 : i32
    scf.if %42 {
      %c0_25 = arith.constant 0 : index
      %c0_26 = arith.constant 0 : index
      %43 = vector.load %arg8[%c0_25, %c0_26] : memref<1x128xf32, #tpu.memory_space<vmem>>, vector<1x128xf32>
      %c0_27 = arith.constant 0 : index
      %c0_28 = arith.constant 0 : index
      %44 = vector.load %arg6[%c0_27, %c0_28] : memref<1x128xf32, #tpu.memory_space<vmem>>, vector<1x128xf32>
      tpu.vector_store %arg6[%c0_27, %c0_28], %43 {strides = array<i32>} : memref<1x128xf32, #tpu.memory_space<vmem>>, vector<1x128xf32>,
      %c0_29 = arith.constant 0 : index
      %c0_30 = arith.constant 0 : index
      %45 = vector.load %arg9[%c0_29, %c0_30] : memref<1x128xf32, #tpu.memory_space<vmem>>, vector<1x128xf32>
      %c0_31 = arith.constant 0 : index
      %c0_32 = arith.constant 0 : index
      %46 = vector.load %arg7[%c0_31, %c0_32] : memref<1x128xf32, #tpu.memory_space<vmem>>, vector<1x128xf32>
      tpu.vector_store %arg7[%c0_31, %c0_32], %45 {strides = array<i32>} : memref<1x128xf32, #tpu.memory_space<vmem>>, vector<1x128xf32>,
    } else {
    }
    return
  }
  func.func @transform_0(%arg0: i32, %arg1: i32, %arg2: i32) -> (i32, i32, i32) {
    %c0_i32 = arith.constant 0 : i32
    %c0_i32_0 = arith.constant 0 : i32
    %c0_i32_1 = arith.constant 0 : i32
    return %arg1, %c0_i32, %c0_i32_0 : i32, i32, i32
  }
  func.func @transform_1(%arg0: i32, %arg1: i32, %arg2: i32) -> (i32, i32) {
    %c0_i32 = arith.constant 0 : i32
    %c0_i32_0 = arith.constant 0 : i32
    return %c0_i32, %arg0 : i32, i32
  }
  func.func @transform_2(%arg0: i32, %arg1: i32, %arg2: i32) -> (i32, i32) {
    %c0_i32 = arith.constant 0 : i32
    %c0_i32_0 = arith.constant 0 : i32
    return %c0_i32, %arg0 : i32, i32
  }
  func.func @transform_3(%arg0: i32, %arg1: i32, %arg2: i32) -> (i32, i32) {
    %c0_i32 = arith.constant 0 : i32
    %c0_i32_0 = arith.constant 0 : i32
    return %c0_i32, %arg0 : i32, i32
  }
  func.func @transform_4(%arg0: i32, %arg1: i32, %arg2: i32) -> (i32, i32) {
    %c0_i32 = arith.constant 0 : i32
    %c0_i32_0 = arith.constant 0 : i32
    return %c0_i32, %arg0 : i32, i32
  }
}

</mosaic_0001>

<bundles_post_ra>
// kernel: tpu_custom_call.1
= control target key start
LH: loop header
LB: loop body
LE: loop exit
PB: predicated region body
PF: predicated region fallthrough
CT: control target
= control target key end

     0   :  { %10 = vsyncpa [#allocation5], 0  ;;  %s844_s0 = inlined_call_operand.vmem [shape: f32[2,16,8], index: 0, kind: input, shape index: {}]   ;;  %s845_s1 = inlined_call_operand.vmem [shape: f32[24,128], index: 1, kind: input, shape index: {}]   ;;  %s846_s2 = inlined_call_operand.vmem [shape: f32[1,128], index: 2, kind: input, shape index: {}]   ;;  %s847_s3 = inlined_call_operand.hbm [shape: f32[1,128], index: 3, kind: output, shape index: {0}]   ;;  %s848_s4 = inlined_call_operand.hbm [shape: f32[1,128], index: 4, kind: output, shape index: {1}]  }
   0x1   :  { %11 = vsyncpa [#allocation7], 0  ;;  %s735_s15 = smov 0   ;;  %s737_s16 = smov 0  }
   0x2   :  { %s739_s17 = smov 0  }
   0x3 LB: > { %s536_s18 = sadd.s32 4294967295, %s703_s17   ;;  %s32_s19 = sadd.s32 1, %s699_s16  ;;  %s703_s17 = sphi %s739_s17, %s17_s17   ;;  %s699_s16 = sphi %s737_s16, %s851_s16   ;;  %s695_s15 = sphi %s735_s15, %s850_s15  }
   0x4   : > { %p34_p0 = scmp.ge.s32.totalorder %s32_s19, 2  ;;  %p541_p1 = scmp.ge.s32.totalorder %s703_s17, 1 }
   0x5   : > { %p203_p2 = scmp.lt.s32.totalorder %s703_s17, 3 }
   0x6   : > { %s853_s19 = smov (%p34_p0, %s32_s19), 0 }
   0x7   : > { %p204_p3 = pnand %p541_p1, %p203_p2 }
   0x8   : > { %p231_p4 = scmp.lt.s32.totalorder (!%p204_p3), %s695_s15, 1  ;;  %v277_v0 = vld [vmem:[%s845_s1] sm:$0xff] (!%p204_p3)  ;;  %v278_v1 = vld [vmem:[%s845_s1 + $0x8] sm:$0xff] (!%p204_p3)  ;;  %v279_v3 = vld [vmem:[%s845_s1 + $0x10] sm:$0xff] (!%p204_p3)  ;;  %s705_s5 = smov (!%p204_p3), 8   ;;  %vm271_vm0 = vcmask (!%p204_p3), 64512  }
   0x9   : > { %207 = sbr.rel (%p204_p3) target bundleno = 434 (0x1b2), region = 32  ;;  %v576_v2 = vpack.c.bf16 (!%p204_p3), %v278_v1, %v277_v0  ;;  %s706_s6 = smov (!%p204_p3), 16   ;;  %vm274_vm1 = vcmask (!%p204_p3), 130048   ;;  %vm287_vm2 = vcmask (!%p204_p3), 195584   ;;  %v548_v18 = vld [vmem:[%s846_s2] ss:$0 sm:$0xff] (!%p204_p3) }
   0xa   : > { %p371_p5 = scmp.eq.s32.totalorder (!%p204_p3), %s695_s15, 0 }
   0xb   : > { %577 = vmatprep.subr.bf16.mxu0 (!%p204_p3), %v576_v2 }
   0xc   : > { %579 = vmatpush3.bf16.msra.mxu0 (!%p204_p3), %v576_v2 }
   0xd   : > { %571 = vmatprep.subr.mxu0 (!%p204_p3), %v279_v3 }
  0x10   : > { %s232_s24 = scalar_select %p231_p4, %s695_s15, 1  ;;  %572 = vmatpush3.msra.mxu0 %v279_v3 }
  0x11   : > { %v707_v25 = vmov (%p371_p5), 0.0  }
  0x12   : > { %s559_s27 = sshll.u32 %s232_s24, 4  ;;  %377 = vst [vmem:[#allocation2] sm:$0x1] (%p371_p5), %v707_v25  ;;  %378 = vst [vmem:[#allocation3] sm:$0x1] (%p371_p5), %v707_v25 }
  0x13   : > { %s235_s30 = scalar_lea.vmem %s844_s0, %s559_s27 }
  0x14   : > { %v544_v4 = vld [vmem:[%s235_s30 + $0x2] sm:$0xff]  ;;  %v545_v6 = vld [vmem:[%s235_s30 + $0xa] sm:$0xf] }
  0x15   : > { %v546_v5 = vld [vmem:[%s235_s30 + $0x4] sm:$0xff]  ;;  %257 = vrot.lane.b32.xlu0 %v544_v4, %s705_s5  ;;  %v547_v7 = vld [vmem:[%s235_s30 + $0xc] sm:$0xf] }
  0x16   : > { %265 = vrot.lane.b32.xlu1 %v546_v5, %s706_s6  ;;  %v245_v8 = vld [vmem:[%s235_s30] sm:$0xff]  ;;  %v246_v13 = vld [vmem:[%s235_s30 + $0x8] sm:$0xf] }
  0x19   : > { %259 = vrot.lane.b32.xlu0 %v545_v6, %s705_s5 }
  0x1a   : > { %267 = vrot.lane.b32.xlu1 %v547_v7, %s706_s6 }
  0x87   : > { %v258_v9 = vpop.permute.xlu0 %257 }
  0x88   : > { %v266_v10 = vpop.permute.xlu1 %265  ;;  %v272_v11 = vsel %vm271_vm0, %v245_v8, %v258_v9 }
  0x89   : > { %v275_v12 = vsel %vm274_vm1, %v272_v11, %v266_v10 }
  0x8a   : > { %573 = vmatprep.mubr.msk.f32.mxu0 %vm287_vm2, %v275_v12 }
  0x8b   : > { %v260_v14 = vpop.permute.xlu0 %259 }
  0x8c   : > { %v268_v15 = vpop.permute.xlu1 %267  ;;  %v273_v16 = vsel %vm271_vm0, %v246_v13, %v260_v14 }
  0x8d   : > { %v276_v17 = vsel %vm274_vm1, %v273_v16, %v268_v15 }
  0x8e   : > { %574 = vmatmul.mubr.msk.f32.vlgmr.msra.gmra.mrb[0].mxu0 %vm287_vm2, %v276_v17 }
 0x15f   : > { %376 = sbr.rel (!%p371_p5) target bundleno = 358 (0x166), region = 36 }
 0x161   : > { %v575_v19 = vpop.f32.mrb[0].mxu0 }
 0x162   : > { %v366_v20 = vadd.f32 %v575_v19, %v548_v18  ;;  %v360_v21 = vpop.f32.mrb[1].mxu0 }
 0x163   : > { %v361_v22 = vadd.f32 %v548_v18, %v360_v21 }
 0x164   : > { %v370_v23 = vmax.f32 %v366_v20, 0.0 }
 0x165   : > { %v369_v24 = vmax.f32 %v361_v22, 0.0 }
 0x166 PF: > { %vm380_vm3 = vcmask 1043456   ;;  %v393_v27 = vmul.f32 %v370_v23, %v370_v23  ;;  %p404_p6 = scmp.eq.s32.totalorder %s695_s15, 1  ;;  %v379_v41 = vld [vmem:[#allocation2] sm:$0x1]  ;;  %v391_v44 = vld [vmem:[#allocation3] sm:$0x1] }
 0x167   : > { %v392_v26 = vmul.f32 %v369_v24, %v369_v24  ;;  %v381_v28 = vsel %vm380_vm3, %v370_v23, 0.0 }
 0x168   : > { %v382_v29 = vadd.f32 %v381_v28, %v369_v24  ;;  %v394_v30 = vsel %vm380_vm3, %v393_v27, 0.0 }
 0x169   : > { %v395_v31 = vadd.f32 %v394_v30, %v392_v26 }
 0x16a   : > { %v383_v32 = vrot.slane %v382_v29, 4 }
 0x16b   : > { %v396_v33 = vrot.slane %v395_v31, 4 }
 0x16c   : > { %v384_v34 = vadd.f32 %v383_v32, %v382_v29 }
 0x16d   : > { %v397_v35 = vadd.f32 %v396_v33, %v395_v31 }
 0x16e   : > { %v385_v36 = vrot.slane %v384_v34, 2 }
 0x16f   : > { %v398_v37 = vrot.slane %v397_v35, 2 }
 0x170   : > { %v386_v38 = vadd.f32 %v385_v36, %v384_v34 }
 0x171   : > { %v399_v39 = vadd.f32 %v398_v37, %v397_v35 }
 0x172   : > { %v387_v40 = vrot.slane %v386_v38, 1 }
 0x173   : > { %v400_v42 = vrot.slane %v399_v39, 1  ;;  %408 = sbr.rel (!%p404_p6) target bundleno = 386 (0x182), region = 40 }
 0x174   : > { %v388_v43 = vadd.f32 %v387_v40, %v386_v38 }
 0x175   : > { %v401_v45 = vadd.f32 %v400_v42, %v399_v39 }
 0x176   : > { %v389_v46 = vadd.f32 %v388_v43, %v379_v41 }
 0x177   : > { %v402_v47 = vadd.f32 %v401_v45, %v391_v44 }
 0x178   : > { %390 = vst [vmem:[#allocation2] sm:$0x1] %v389_v46 }
 0x179   : > { %403 = vst [vmem:[#allocation3] sm:$0x1] %v402_v47 }
 0x17f   : > { %v409_v48 = vld [vmem:[#allocation2] sm:$0x1] }
 0x180   : > { %v411_v49 = vld [vmem:[#allocation3] sm:$0x1]  ;;  %410 = vst [vmem:[#allocation4] sm:$0x1] %v409_v48 }
 0x181   : > { %412 = vst [vmem:[#allocation6] sm:$0x1] %v411_v49 }
 0x182 PF: > { %p779_p7 = scmp.eq.s32.totalorder %s536_s18, 1  ;;  %s708_s10 = smov [#allocation4]  }
 0x183   : > { %s422_s11 = sshll.u32 %s708_s10, 4  ;;  %s709_s12 = smov [#allocation6]   ;;  %s423_s11 = int_to_ptr.vmem [resolvable:$true] %s422_s11 }
 0x184   : > { %s435_s13 = sshll.u32 %s709_s12, 4  ;;  %s621_s14 = scalar_lea.vmem %s423_s11, 16  ;;  %s783_s13 = int_to_ptr.vmem [resolvable:$true] %s435_s13 }
 0x185   : > { %p622_p8 = scmp.ne.s32.totalorder %s423_s11, %s621_s14  ;;  %s627_s15 = scalar_lea.vmem %s423_s11, 32 }
 0x186   : > { %p628_p11 = scmp.lt.s32.totalorder %s423_s11, %s423_s11  ;;  %p629_p12 = scmp.lt.s32.totalorder %s627_s15, %s621_s14 }
 0x187   : > { %p623_p9 = pnand %p622_p8, %p779_p7 }
 0x188   : > { %p630_p13 = por %p629_p12, %p628_p11 }
 0x189   : > { %p624_p10 = pneg %p623_p9 }
 0x18b   : > { %p631_p0 = pnand %p630_p13, %p624_p10 }
 0x18d   : > { %634 = shalt.err (!%p631_p0)
}
 0x18e   : > { %s635_s21 = scalar_lea.hbm %s847_s3, 16 }
 0x18f   : > { %p636_p1 = scmp.ne.s32.totalorder %s847_s3, %s635_s21  ;;  %p641_p4 = scmp.lt.u32.totalorder %s635_s21, %s847_s3 }
 0x191   : > { %p637_p2 = pnand %p636_p1, %p779_p7 }
 0x193   : > { %p638_p3 = pneg %p637_p2 }
 0x195   : > { %p643_p5 = pnand %p641_p4, %p638_p3 }
 0x197   : > { %646 = shalt.err (!%p643_p5)
}
 0x198   : > { %581 = dma.vmem_to_hbm [thread:$0]  (%p779_p7), %s423_s11, 16, %s847_s3, [#allocation5]  }
 0x199   : > { %s647_s28 = scalar_lea.vmem %s783_s13, 16  ;;  %s653_s29 = scalar_lea.vmem %s783_s13, 32 }
 0x19a   : > { %p648_p6 = scmp.ne.s32.totalorder %s783_s13, %s647_s28  ;;  %p654_p10 = scmp.lt.s32.totalorder %s783_s13, %s783_s13 }
 0x19b   : > { %p655_p11 = scmp.lt.s32.totalorder %s653_s29, %s647_s28 }
 0x19c   : > { %p649_p8 = pnand %p648_p6, %p779_p7 }
 0x19d   : > { %p656_p12 = por %p655_p11, %p654_p10 }
 0x19e   : > { %p650_p9 = pneg %p649_p8 }
 0x1a0   : > { %p657_p13 = pnand %p656_p12, %p650_p9 }
 0x1a2   : > { %660 = shalt.err (!%p657_p13)
}
 0x1a3   : > { %s661_s6 = scalar_lea.hbm %s848_s4, 16 }
 0x1a4   : > { %p662_p0 = scmp.ne.s32.totalorder %s848_s4, %s661_s6  ;;  %p667_p3 = scmp.lt.u32.totalorder %s661_s6, %s848_s4 }
 0x1a6   : > { %p663_p1 = pnand %p662_p0, %p779_p7 }
 0x1a8   : > { %p664_p2 = pneg %p663_p1 }
 0x1aa   : > { %p669_p4 = pnand %p667_p3, %p664_p2 }
 0x1ac   : > { %672 = shalt.err (!%p669_p4)
}
 0x1ad   : > { %583 = dma.vmem_to_hbm [thread:$0]  (%p779_p7), %s783_s13, 16, %s848_s4, [#allocation7]  }
 0x1ae   : > { %686 = dma.done.wait (%p779_p7), [#allocation5], 16  }
 0x1af   : > { %688 = vsyncadd (%p779_p7), [#allocation5], 4294967280 }
 0x1b0   : > { %690 = dma.done.wait (%p779_p7), [#allocation7], 16  }
 0x1b1   : > { %692 = vsyncadd (%p779_p7), [#allocation7], 4294967280 }
 0x1b2 PF: > { %s17_s17 = sadd.s32 1, %s703_s17   ;;  %s850_s15 = smov %s699_s16 }
 0x1b3   : > { %p14_p5 = scmp.ge.s32.totalorder %s17_s17, 4   ;;  %s851_s16 = smov %s853_s19 }
 0x1b5   :  { %16 = sbr.rel (!%p14_p5) target bundleno = 3 (0x3), region = 86 }
 0x1bc   :  { %452 = vsyncpa [#allocation5], 1 }
 0x1bd   :  { %454 = vsyncpa [#allocation5 + $0x1], 1 }
 0x1be   :  { %455 = vsyncpa [#allocation7], 1 }

</bundles_post_ra>
